<compile_context>
chip_gen: v6e
topology: v6e:2x2x1
jax: 0.10.0
libtpu: 0.0.40
codegen_flags: <defaults>
</compile_context>

<pallas_src>
import functools

import jax
import jax.numpy as jnp
from jax.experimental import pallas as pl
from jax.experimental.pallas import tpu as pltpu

LANE = 128


def _round_up(x, m):
    return ((x + m - 1) // m) * m


def char_rnn_kernel(seq_ref,                                   # SMEM (T,) int32 (scalar prefetch)
                    emb_ref, waa_ref, wax_ref, wya_ref,        # VMEM weights (in,out), padded
                    bh_ref, bya_ref, h0_ref,                   # VMEM biases / initial hidden
                    out_ref, hlast_ref,                        # outputs (T,Cp), (1,Hp)
                    xproj_ref, hall_ref):                      # VMEM scratch
    T = out_ref.shape[0]

    # (1) Input projection hoisted out of the recurrence and fused with the
    #     embedding gather: project the whole embedding table once
    #     (n_chars, Ep) @ (Ep, Hp) with (baa + bax) folded in. The per-step
    #     input contribution is then a single dynamic row read.
    xproj_ref[...] = (
        jnp.dot(emb_ref[...], wax_ref[...], preferred_element_type=jnp.float32)
        + bh_ref[...])

    # (2) Loop-invariant weight load hoisted out of the loop.
    waa = waa_ref[...]                                         # (Hp, Hp)

    # (3) Serial recurrence: one small (1,Hp)x(Hp,Hp) matmul + tanh per step.
    def step(t, h):
        idx = seq_ref[t]
        x_c = xproj_ref[pl.ds(idx, 1), :]                      # (1, Hp) gathered row
        h_new = jnp.tanh(
            jnp.dot(h, waa, preferred_element_type=jnp.float32) + x_c)
        hall_ref[pl.ds(t, 1), :] = h_new                       # stash hidden state
        return h_new

    h_last = jax.lax.fori_loop(0, T, step, h0_ref[...], unroll=True)
    hlast_ref[...] = h_last

    # (4) Output projection batched over all T steps: a single (T,Hp)x(Hp,Cp)
    #     matmul + bias and one dense lane-aligned store.
    out_ref[...] = (
        jnp.dot(hall_ref[...], wya_ref[...], preferred_element_type=jnp.float32)
        + bya_ref[...])


def prepare_params(params):
    """One-time layout prep: transpose nn.Linear weights to (in,out) and
    zero-pad lane dims (E, H, C) up to multiples of 128."""
    n_chars, E = params["embedding"].shape
    H = params["waa_w"].shape[0]
    C = params["wya_w"].shape[0]
    Ep, Hp, Cp = _round_up(E, LANE), _round_up(H, LANE), _round_up(C, LANE)

    def pad2(a, r, c):
        return jnp.zeros((r, c), jnp.float32).at[:a.shape[0], :a.shape[1]].set(
            a.astype(jnp.float32))

    return {
        "emb": pad2(params["embedding"], n_chars, Ep),         # (n_chars, Ep)
        "waa": pad2(params["waa_w"].T, Hp, Hp),                # (Hp, Hp)
        "wax": pad2(params["wax_w"].T, Ep, Hp),                # (Ep, Hp)
        "wya": pad2(params["wya_w"].T, Hp, Cp),                # (Hp, Cp)
        "bh": jnp.zeros((1, Hp), jnp.float32).at[0, :H].set(
            params["waa_b"] + params["wax_b"]),                # baa + bax, padded
        "bya": jnp.zeros((1, Cp), jnp.float32).at[0, :C].set(params["wya_b"]),
    }


@functools.partial(jax.jit, static_argnames=("H", "C"))
def char_rnn_forward(input_seq, prep, *, H, C, hidden=None):
    """Equivalent of CharRNN.forward: returns (out (T, n_chars), hidden_last (H,))."""
    T = input_seq.shape[0]
    n_chars, _ = prep["emb"].shape
    Hp = prep["waa"].shape[0]
    Cp = prep["bya"].shape[1]

    h0 = jnp.zeros((1, Hp), jnp.float32)
    if hidden is not None:
        h0 = h0.at[0, :H].set(hidden.astype(jnp.float32))

    vmem = pl.BlockSpec(memory_space=pltpu.MemorySpace.VMEM)
    grid_spec = pltpu.PrefetchScalarGridSpec(
        num_scalar_prefetch=1,                                 # input_seq -> SMEM
        grid=(1,),
        in_specs=[vmem] * 7,
        out_specs=(vmem, vmem),
        scratch_shapes=[
            pltpu.VMEM((n_chars, Hp), jnp.float32),            # projected-embedding table
            pltpu.VMEM((T, Hp), jnp.float32),                  # all hidden states
        ],
    )

    out_p, hlast_p = pl.pallas_call(
        char_rnn_kernel,
        out_shape=(jax.ShapeDtypeStruct((T, Cp), jnp.float32),
                   jax.ShapeDtypeStruct((1, Hp), jnp.float32)),
        grid_spec=grid_spec,
        compiler_params=pltpu.CompilerParams(
            dimension_semantics=("arbitrary",)),
    )(input_seq.astype(jnp.int32),
      prep["emb"], prep["waa"], prep["wax"], prep["wya"],
      prep["bh"], prep["bya"], h0)

    return out_p[:, :C], hlast_p[0, :H]


def init_params(key, n_chars, embedding_size, hidden_size):
    ks = jax.random.split(key, 7)
    scale = 0.1
    return {
        "embedding": scale * jax.random.normal(ks[0], (n_chars, embedding_size), jnp.float32),
        "waa_w": scale * jax.random.normal(ks[1], (hidden_size, hidden_size), jnp.float32),
        "waa_b": scale * jax.random.normal(ks[2], (hidden_size,), jnp.float32),
        "wax_w": scale * jax.random.normal(ks[3], (hidden_size, embedding_size), jnp.float32),
        "wax_b": scale * jax.random.normal(ks[4], (hidden_size,), jnp.float32),
        "wya_w": scale * jax.random.normal(ks[5], (n_chars, hidden_size), jnp.float32),
        "wya_b": scale * jax.random.normal(ks[6], (n_chars,), jnp.float32),
    }


def char_rnn_reference(input_seq, params, hidden=None):
    """Pure-JAX reference of the PyTorch forward, for verification."""
    emb = params["embedding"][input_seq]
    H = params["waa_w"].shape[0]
    h = jnp.zeros((H,), jnp.float32) if hidden is None else hidden
    outs = []
    for t in range(input_seq.shape[0]):
        h = jnp.tanh(params["waa_w"] @ h + params["waa_b"]
                     + params["wax_w"] @ emb[t] + params["wax_b"])
        outs.append(params["wya_w"] @ h + params["wya_b"])
    return jnp.stack(outs), h


if __name__ == "__main__":
    n_chars, embedding_size, hidden_size, seq_len = 64, 16, 32, 8

    key = jax.random.PRNGKey(0)
    k_param, k_seq, k_h = jax.random.split(key, 3)
    params = init_params(k_param, n_chars, embedding_size, hidden_size)
    input_seq = jax.random.randint(k_seq, (seq_len,), 0, n_chars, dtype=jnp.int32)

    prep = prepare_params(params)   # one-time transpose + pad (not per call)

    # Default (zero) initial hidden state.
    out, h_last = char_rnn_forward(input_seq, prep, H=hidden_size, C=n_chars)
    out = jax.block_until_ready(out)
    h_last = jax.block_until_ready(h_last)

    ref_out, ref_h = char_rnn_reference(input_seq, params)
    assert out.shape == (seq_len, n_chars) and h_last.shape == (hidden_size,)
    assert jnp.allclose(out, ref_out, atol=1e-5, rtol=1e-5)
    assert jnp.allclose(h_last, ref_h, atol=1e-5, rtol=1e-5)

    # Provided (non-zero) initial hidden state path.
    h_init = 0.1 * jax.random.normal(k_h, (hidden_size,), jnp.float32)
    out2, h_last2 = char_rnn_forward(input_seq, prep, H=hidden_size, C=n_chars,
                                     hidden=h_init)
    out2 = jax.block_until_ready(out2)
    h_last2 = jax.block_until_ready(h_last2)
    ref_out2, ref_h2 = char_rnn_reference(input_seq, params, hidden=h_init)
    assert jnp.allclose(out2, ref_out2, atol=1e-5, rtol=1e-5)
    assert jnp.allclose(h_last2, ref_h2, atol=1e-5, rtol=1e-5)

    print("KERNEL_OK")
</pallas_src>

<mosaic_0001>
module attributes {stable_mosaic.version = 11 : i64} {
  func.func @char_rnn_kernel(%arg0: i32, %arg1: memref<8xi32, #tpu.memory_space<smem>>, %arg2: memref<64x128xf32, #tpu.memory_space<vmem>>, %arg3: memref<128x128xf32, #tpu.memory_space<vmem>>, %arg4: memref<128x128xf32, #tpu.memory_space<vmem>>, %arg5: memref<128x128xf32, #tpu.memory_space<vmem>>, %arg6: memref<1x128xf32, #tpu.memory_space<vmem>>, %arg7: memref<1x128xf32, #tpu.memory_space<vmem>>, %arg8: memref<1x128xf32, #tpu.memory_space<vmem>>, %arg9: memref<8x128xf32, #tpu.memory_space<vmem>>, %arg10: memref<1x128xf32, #tpu.memory_space<vmem>>, %arg11: memref<64x128xf32, #tpu.memory_space<vmem>>, %arg12: memref<8x128xf32, #tpu.memory_space<vmem>>) attributes {dimension_semantics = [#tpu.dimension_semantics<arbitrary>], iteration_bounds = array<i64: 1>, scalar_prefetch = 1 : i64, scratch_operands = 2 : i64, tpu.core_type = #tpu.core_type<tc>, window_params = [{pipeline_mode = #tpu.pipeline_mode<synchronous>, transform_indices = @transform_0, window_bounds = array<i64: 64, 128>}, {pipeline_mode = #tpu.pipeline_mode<synchronous>, transform_indices = @transform_1, window_bounds = array<i64: 128, 128>}, {pipeline_mode = #tpu.pipeline_mode<synchronous>, transform_indices = @transform_2, window_bounds = array<i64: 128, 128>}, {pipeline_mode = #tpu.pipeline_mode<synchronous>, transform_indices = @transform_3, window_bounds = array<i64: 128, 128>}, {pipeline_mode = #tpu.pipeline_mode<synchronous>, transform_indices = @transform_4, window_bounds = array<i64: 1, 128>}, {pipeline_mode = #tpu.pipeline_mode<synchronous>, transform_indices = @transform_5, window_bounds = array<i64: 1, 128>}, {pipeline_mode = #tpu.pipeline_mode<synchronous>, transform_indices = @transform_6, window_bounds = array<i64: 1, 128>}, {pipeline_mode = #tpu.pipeline_mode<synchronous>, transform_indices = @transform_7, window_bounds = array<i64: 8, 128>}, {pipeline_mode = #tpu.pipeline_mode<synchronous>, transform_indices = @transform_8, window_bounds = array<i64: 1, 128>}]} {
    %c0 = arith.constant 0 : index
    %c0_0 = arith.constant 0 : index
    %0 = vector.load %arg2[%c0, %c0_0] : memref<64x128xf32, #tpu.memory_space<vmem>>, vector<64x128xf32>
    %c0_1 = arith.constant 0 : index
    %c0_2 = arith.constant 0 : index
    %1 = vector.load %arg4[%c0_1, %c0_2] : memref<128x128xf32, #tpu.memory_space<vmem>>, vector<128x128xf32>
    %cst = arith.constant dense<0.000000e+00> : vector<64x128xf32>
    %2 = tpu.matmul %0, %1, %cst {dimension_numbers = #tpu.dot_dimension_numbers<[1], [0], [0], [1], [0, 0, 1, 1], [], []>} : vector<64x128xf32>, vector<128x128xf32>, vector<64x128xf32> -> vector<64x128xf32>
    %c0_3 = arith.constant 0 : index
    %c0_4 = arith.constant 0 : index
    %3 = vector.load %arg6[%c0_3, %c0_4] : memref<1x128xf32, #tpu.memory_space<vmem>>, vector<1x128xf32>
    %4 = vector.broadcast %3 : vector<1x128xf32> to vector<64x128xf32>
    %5 = arith.addf %2, %4 : vector<64x128xf32>
    %c0_5 = arith.constant 0 : index
    %c0_6 = arith.constant 0 : index
    %6 = vector.load %arg11[%c0_5, %c0_6] : memref<64x128xf32, #tpu.memory_space<vmem>>, vector<64x128xf32>
    tpu.vector_store %arg11[%c0_5, %c0_6], %5 {strides = array<i32>} : memref<64x128xf32, #tpu.memory_space<vmem>>, vector<64x128xf32>,
    %c0_7 = arith.constant 0 : index
    %c0_8 = arith.constant 0 : index
    %7 = vector.load %arg3[%c0_7, %c0_8] : memref<128x128xf32, #tpu.memory_space<vmem>>, vector<128x128xf32>
    %c0_9 = arith.constant 0 : index
    %c0_10 = arith.constant 0 : index
    %8 = vector.load %arg8[%c0_9, %c0_10] : memref<1x128xf32, #tpu.memory_space<vmem>>, vector<1x128xf32>
    %c0_i32 = arith.constant 0 : i32
    %9 = arith.index_cast %c0_i32 : i32 to index
    %10 = memref.load %arg1[%9] : memref<8xi32, #tpu.memory_space<smem>>
    %11 = arith.index_cast %10 : i32 to index
    %c0_11 = arith.constant 0 : index
    %12 = vector.load %arg11[%11, %c0_11] : memref<64x128xf32, #tpu.memory_space<vmem>>, vector<1x128xf32>
    %cst_12 = arith.constant dense<0.000000e+00> : vector<1x128xf32>
    %13 = tpu.matmul %8, %7, %cst_12 {dimension_numbers = #tpu.dot_dimension_numbers<[1], [0], [0], [1], [0, 0, 1, 1], [], []>} : vector<1x128xf32>, vector<128x128xf32>, vector<1x128xf32> -> vector<1x128xf32>
    %14 = arith.addf %13, %12 : vector<1x128xf32>
    %15 = math.tanh %14 : vector<1x128xf32>
    %16 = arith.index_cast %c0_i32 : i32 to index
    %c0_13 = arith.constant 0 : index
    %17 = vector.load %arg12[%16, %c0_13] : memref<8x128xf32, #tpu.memory_space<vmem>>, vector<1x128xf32>
    tpu.vector_store %arg12[%16, %c0_13], %15 {strides = array<i32>} : memref<8x128xf32, #tpu.memory_space<vmem>>, vector<1x128xf32>,
    %c1_i32 = arith.constant 1 : i32
    %18 = arith.index_cast %c1_i32 : i32 to index
    %19 = memref.load %arg1[%18] : memref<8xi32, #tpu.memory_space<smem>>
    %20 = arith.index_cast %19 : i32 to index
    %c0_14 = arith.constant 0 : index
    %21 = vector.load %arg11[%20, %c0_14] : memref<64x128xf32, #tpu.memory_space<vmem>>, vector<1x128xf32>
    %cst_15 = arith.constant dense<0.000000e+00> : vector<1x128xf32>
    %22 = tpu.matmul %15, %7, %cst_15 {dimension_numbers = #tpu.dot_dimension_numbers<[1], [0], [0], [1], [0, 0, 1, 1], [], []>} : vector<1x128xf32>, vector<128x128xf32>, vector<1x128xf32> -> vector<1x128xf32>
    %23 = arith.addf %22, %21 : vector<1x128xf32>
    %24 = math.tanh %23 : vector<1x128xf32>
    %25 = arith.index_cast %c1_i32 : i32 to index
    %c0_16 = arith.constant 0 : index
    %26 = vector.load %arg12[%25, %c0_16] : memref<8x128xf32, #tpu.memory_space<vmem>>, vector<1x128xf32>
    tpu.vector_store %arg12[%25, %c0_16], %24 {strides = array<i32>} : memref<8x128xf32, #tpu.memory_space<vmem>>, vector<1x128xf32>,
    %c2_i32 = arith.constant 2 : i32
    %27 = arith.index_cast %c2_i32 : i32 to index
    %28 = memref.load %arg1[%27] : memref<8xi32, #tpu.memory_space<smem>>
    %29 = arith.index_cast %28 : i32 to index
    %c0_17 = arith.constant 0 : index
    %30 = vector.load %arg11[%29, %c0_17] : memref<64x128xf32, #tpu.memory_space<vmem>>, vector<1x128xf32>
    %cst_18 = arith.constant dense<0.000000e+00> : vector<1x128xf32>
    %31 = tpu.matmul %24, %7, %cst_18 {dimension_numbers = #tpu.dot_dimension_numbers<[1], [0], [0], [1], [0, 0, 1, 1], [], []>} : vector<1x128xf32>, vector<128x128xf32>, vector<1x128xf32> -> vector<1x128xf32>
    %32 = arith.addf %31, %30 : vector<1x128xf32>
    %33 = math.tanh %32 : vector<1x128xf32>
    %34 = arith.index_cast %c2_i32 : i32 to index
    %c0_19 = arith.constant 0 : index
    %35 = vector.load %arg12[%34, %c0_19] : memref<8x128xf32, #tpu.memory_space<vmem>>, vector<1x128xf32>
    tpu.vector_store %arg12[%34, %c0_19], %33 {strides = array<i32>} : memref<8x128xf32, #tpu.memory_space<vmem>>, vector<1x128xf32>,
    %c3_i32 = arith.constant 3 : i32
    %36 = arith.index_cast %c3_i32 : i32 to index
    %37 = memref.load %arg1[%36] : memref<8xi32, #tpu.memory_space<smem>>
    %38 = arith.index_cast %37 : i32 to index
    %c0_20 = arith.constant 0 : index
    %39 = vector.load %arg11[%38, %c0_20] : memref<64x128xf32, #tpu.memory_space<vmem>>, vector<1x128xf32>
    %cst_21 = arith.constant dense<0.000000e+00> : vector<1x128xf32>
    %40 = tpu.matmul %33, %7, %cst_21 {dimension_numbers = #tpu.dot_dimension_numbers<[1], [0], [0], [1], [0, 0, 1, 1], [], []>} : vector<1x128xf32>, vector<128x128xf32>, vector<1x128xf32> -> vector<1x128xf32>
    %41 = arith.addf %40, %39 : vector<1x128xf32>
    %42 = math.tanh %41 : vector<1x128xf32>
    %43 = arith.index_cast %c3_i32 : i32 to index
    %c0_22 = arith.constant 0 : index
    %44 = vector.load %arg12[%43, %c0_22] : memref<8x128xf32, #tpu.memory_space<vmem>>, vector<1x128xf32>
    tpu.vector_store %arg12[%43, %c0_22], %42 {strides = array<i32>} : memref<8x128xf32, #tpu.memory_space<vmem>>, vector<1x128xf32>,
    %c4_i32 = arith.constant 4 : i32
    %45 = arith.index_cast %c4_i32 : i32 to index
    %46 = memref.load %arg1[%45] : memref<8xi32, #tpu.memory_space<smem>>
    %47 = arith.index_cast %46 : i32 to index
    %c0_23 = arith.constant 0 : index
    %48 = vector.load %arg11[%47, %c0_23] : memref<64x128xf32, #tpu.memory_space<vmem>>, vector<1x128xf32>
    %cst_24 = arith.constant dense<0.000000e+00> : vector<1x128xf32>
    %49 = tpu.matmul %42, %7, %cst_24 {dimension_numbers = #tpu.dot_dimension_numbers<[1], [0], [0], [1], [0, 0, 1, 1], [], []>} : vector<1x128xf32>, vector<128x128xf32>, vector<1x128xf32> -> vector<1x128xf32>
    %50 = arith.addf %49, %48 : vector<1x128xf32>
    %51 = math.tanh %50 : vector<1x128xf32>
    %52 = arith.index_cast %c4_i32 : i32 to index
    %c0_25 = arith.constant 0 : index
    %53 = vector.load %arg12[%52, %c0_25] : memref<8x128xf32, #tpu.memory_space<vmem>>, vector<1x128xf32>
    tpu.vector_store %arg12[%52, %c0_25], %51 {strides = array<i32>} : memref<8x128xf32, #tpu.memory_space<vmem>>, vector<1x128xf32>,
    %c5_i32 = arith.constant 5 : i32
    %54 = arith.index_cast %c5_i32 : i32 to index
    %55 = memref.load %arg1[%54] : memref<8xi32, #tpu.memory_space<smem>>
    %56 = arith.index_cast %55 : i32 to index
    %c0_26 = arith.constant 0 : index
    %57 = vector.load %arg11[%56, %c0_26] : memref<64x128xf32, #tpu.memory_space<vmem>>, vector<1x128xf32>
    %cst_27 = arith.constant dense<0.000000e+00> : vector<1x128xf32>
    %58 = tpu.matmul %51, %7, %cst_27 {dimension_numbers = #tpu.dot_dimension_numbers<[1], [0], [0], [1], [0, 0, 1, 1], [], []>} : vector<1x128xf32>, vector<128x128xf32>, vector<1x128xf32> -> vector<1x128xf32>
    %59 = arith.addf %58, %57 : vector<1x128xf32>
    %60 = math.tanh %59 : vector<1x128xf32>
    %61 = arith.index_cast %c5_i32 : i32 to index
    %c0_28 = arith.constant 0 : index
    %62 = vector.load %arg12[%61, %c0_28] : memref<8x128xf32, #tpu.memory_space<vmem>>, vector<1x128xf32>
    tpu.vector_store %arg12[%61, %c0_28], %60 {strides = array<i32>} : memref<8x128xf32, #tpu.memory_space<vmem>>, vector<1x128xf32>,
    %c6_i32 = arith.constant 6 : i32
    %63 = arith.index_cast %c6_i32 : i32 to index
    %64 = memref.load %arg1[%63] : memref<8xi32, #tpu.memory_space<smem>>
    %65 = arith.index_cast %64 : i32 to index
    %c0_29 = arith.constant 0 : index
    %66 = vector.load %arg11[%65, %c0_29] : memref<64x128xf32, #tpu.memory_space<vmem>>, vector<1x128xf32>
    %cst_30 = arith.constant dense<0.000000e+00> : vector<1x128xf32>
    %67 = tpu.matmul %60, %7, %cst_30 {dimension_numbers = #tpu.dot_dimension_numbers<[1], [0], [0], [1], [0, 0, 1, 1], [], []>} : vector<1x128xf32>, vector<128x128xf32>, vector<1x128xf32> -> vector<1x128xf32>
    %68 = arith.addf %67, %66 : vector<1x128xf32>
    %69 = math.tanh %68 : vector<1x128xf32>
    %70 = arith.index_cast %c6_i32 : i32 to index
    %c0_31 = arith.constant 0 : index
    %71 = vector.load %arg12[%70, %c0_31] : memref<8x128xf32, #tpu.memory_space<vmem>>, vector<1x128xf32>
    tpu.vector_store %arg12[%70, %c0_31], %69 {strides = array<i32>} : memref<8x128xf32, #tpu.memory_space<vmem>>, vector<1x128xf32>,
    %c7_i32 = arith.constant 7 : i32
    %72 = arith.index_cast %c7_i32 : i32 to index
    %73 = memref.load %arg1[%72] : memref<8xi32, #tpu.memory_space<smem>>
    %74 = arith.index_cast %73 : i32 to index
    %c0_32 = arith.constant 0 : index
    %75 = vector.load %arg11[%74, %c0_32] : memref<64x128xf32, #tpu.memory_space<vmem>>, vector<1x128xf32>
    %cst_33 = arith.constant dense<0.000000e+00> : vector<1x128xf32>
    %76 = tpu.matmul %69, %7, %cst_33 {dimension_numbers = #tpu.dot_dimension_numbers<[1], [0], [0], [1], [0, 0, 1, 1], [], []>} : vector<1x128xf32>, vector<128x128xf32>, vector<1x128xf32> -> vector<1x128xf32>
    %77 = arith.addf %76, %75 : vector<1x128xf32>
    %78 = math.tanh %77 : vector<1x128xf32>
    %79 = arith.index_cast %c7_i32 : i32 to index
    %c0_34 = arith.constant 0 : index
    %80 = vector.load %arg12[%79, %c0_34] : memref<8x128xf32, #tpu.memory_space<vmem>>, vector<1x128xf32>
    tpu.vector_store %arg12[%79, %c0_34], %78 {strides = array<i32>} : memref<8x128xf32, #tpu.memory_space<vmem>>, vector<1x128xf32>,
    %c8_i32 = arith.constant 8 : i32
    %c0_35 = arith.constant 0 : index
    %c0_36 = arith.constant 0 : index
    %81 = vector.load %arg10[%c0_35, %c0_36] : memref<1x128xf32, #tpu.memory_space<vmem>>, vector<1x128xf32>
    tpu.vector_store %arg10[%c0_35, %c0_36], %78 {strides = array<i32>} : memref<1x128xf32, #tpu.memory_space<vmem>>, vector<1x128xf32>,
    %c0_37 = arith.constant 0 : index
    %c0_38 = arith.constant 0 : index
    %82 = vector.load %arg12[%c0_37, %c0_38] : memref<8x128xf32, #tpu.memory_space<vmem>>, vector<8x128xf32>
    %c0_39 = arith.constant 0 : index
    %c0_40 = arith.constant 0 : index
    %83 = vector.load %arg5[%c0_39, %c0_40] : memref<128x128xf32, #tpu.memory_space<vmem>>, vector<128x128xf32>
    %cst_41 = arith.constant dense<0.000000e+00> : vector<8x128xf32>
    %84 = tpu.matmul %82, %83, %cst_41 {dimension_numbers = #tpu.dot_dimension_numbers<[1], [0], [0], [1], [0, 0, 1, 1], [], []>} : vector<8x128xf32>, vector<128x128xf32>, vector<8x128xf32> -> vector<8x128xf32>
    %c0_42 = arith.constant 0 : index
    %c0_43 = arith.constant 0 : index
    %85 = vector.load %arg7[%c0_42, %c0_43] : memref<1x128xf32, #tpu.memory_space<vmem>>, vector<1x128xf32>
    %86 = vector.broadcast %85 : vector<1x128xf32> to vector<8x128xf32>
    %87 = arith.addf %84, %86 : vector<8x128xf32>
    %c0_44 = arith.constant 0 : index
    %c0_45 = arith.constant 0 : index
    %88 = vector.load %arg9[%c0_44, %c0_45] : memref<8x128xf32, #tpu.memory_space<vmem>>, vector<8x128xf32>
    tpu.vector_store %arg9[%c0_44, %c0_45], %87 {strides = array<i32>} : memref<8x128xf32, #tpu.memory_space<vmem>>, vector<8x128xf32>,
    return
  }
  func.func @transform_0(%arg0: i32, %arg1: memref<8xi32, #tpu.memory_space<smem>>) -> (i32, i32) {
    %c0_i32 = arith.constant 0 : i32
    %c0_i32_0 = arith.constant 0 : i32
    %c0_i32_1 = arith.constant 0 : i32
    return %c0_i32, %c0_i32_0 : i32, i32
  }
  func.func @transform_1(%arg0: i32, %arg1: memref<8xi32, #tpu.memory_space<smem>>) -> (i32, i32) {
    %c0_i32 = arith.constant 0 : i32
    %c0_i32_0 = arith.constant 0 : i32
    %c0_i32_1 = arith.constant 0 : i32
    return %c0_i32, %c0_i32_0 : i32, i32
  }
  func.func @transform_2(%arg0: i32, %arg1: memref<8xi32, #tpu.memory_space<smem>>) -> (i32, i32) {
    %c0_i32 = arith.constant 0 : i32
    %c0_i32_0 = arith.constant 0 : i32
    %c0_i32_1 = arith.constant 0 : i32
    return %c0_i32, %c0_i32_0 : i32, i32
  }
  func.func @transform_3(%arg0: i32, %arg1: memref<8xi32, #tpu.memory_space<smem>>) -> (i32, i32) {
    %c0_i32 = arith.constant 0 : i32
    %c0_i32_0 = arith.constant 0 : i32
    %c0_i32_1 = arith.constant 0 : i32
    return %c0_i32, %c0_i32_0 : i32, i32
  }
  func.func @transform_4(%arg0: i32, %arg1: memref<8xi32, #tpu.memory_space<smem>>) -> (i32, i32) {
    %c0_i32 = arith.constant 0 : i32
    %c0_i32_0 = arith.constant 0 : i32
    %c0_i32_1 = arith.constant 0 : i32
    return %c0_i32, %c0_i32_0 : i32, i32
  }
  func.func @transform_5(%arg0: i32, %arg1: memref<8xi32, #tpu.memory_space<smem>>) -> (i32, i32) {
    %c0_i32 = arith.constant 0 : i32
    %c0_i32_0 = arith.constant 0 : i32
    %c0_i32_1 = arith.constant 0 : i32
    return %c0_i32, %c0_i32_0 : i32, i32
  }
  func.func @transform_6(%arg0: i32, %arg1: memref<8xi32, #tpu.memory_space<smem>>) -> (i32, i32) {
    %c0_i32 = arith.constant 0 : i32
    %c0_i32_0 = arith.constant 0 : i32
    %c0_i32_1 = arith.constant 0 : i32
    return %c0_i32, %c0_i32_0 : i32, i32
  }
  func.func @transform_7(%arg0: i32, %arg1: memref<8xi32, #tpu.memory_space<smem>>) -> (i32, i32) {
    %c0_i32 = arith.constant 0 : i32
    %c0_i32_0 = arith.constant 0 : i32
    %c0_i32_1 = arith.constant 0 : i32
    return %c0_i32, %c0_i32_0 : i32, i32
  }
  func.func @transform_8(%arg0: i32, %arg1: memref<8xi32, #tpu.memory_space<smem>>) -> (i32, i32) {
    %c0_i32 = arith.constant 0 : i32
    %c0_i32_0 = arith.constant 0 : i32
    %c0_i32_1 = arith.constant 0 : i32
    return %c0_i32, %c0_i32_0 : i32, i32
  }
}

</mosaic_0001>

<bundles_post_ra>
// kernel: char_rnn_forward.1
= control target key start
LH: loop header
LB: loop body
LE: loop exit
PB: predicated region body
PF: predicated region fallthrough
CT: control target
= control target key end

     0   :  { %s2094_s0 = inlined_call_operand.vmem [shape: s32[8], index: 0, kind: input, shape index: {}]   ;;  %s2095_s1 = inlined_call_operand.hbm [shape: f32[64,128], index: 1, kind: input, shape index: {}]   ;;  %s2096_s2 = inlined_call_operand.hbm [shape: f32[128,128], index: 2, kind: input, shape index: {}]   ;;  %s2097_s3 = inlined_call_operand.hbm [shape: f32[128,128], index: 3, kind: input, shape index: {}]   ;;  %s2098_s4 = inlined_call_operand.hbm [shape: f32[128,128], index: 4, kind: input, shape index: {}]   ;;  %s2099_s5 = inlined_call_operand.vmem [shape: f32[1,128], index: 5, kind: input, shape index: {}]   ;;  %s2100_s6 = inlined_call_operand.vmem [shape: f32[1,128], index: 6, kind: input, shape index: {}]   ;;  %s2101_s7 = inlined_call_operand.vmem [shape: f32[1,128], index: 7, kind: input, shape index: {}]   ;;  %s2102_s8 = inlined_call_operand.hbm [shape: f32[8,128], index: 8, kind: output, shape index: {0}]   ;;  %s2103_s9 = inlined_call_operand.vmem [shape: f32[1,128], index: 9, kind: output, shape index: {1}]  }
   0x1   :  { %s15_s11 = sshll.u32 %s2094_s0, 4  ;;  %s16_s11 = int_to_ptr.vmem [resolvable:$true] %s15_s11 }
   0x2   :  { %s1548_s12 = scalar_lea.vmem %s16_s11, 16  ;;  %p1553_p1 = scmp.lt.s32.totalorder %s16_s11, %s16_s11 }
   0x3   :  { %p1549_p0 = scmp.ne.s32.totalorder %s16_s11, %s1548_s12  ;;  %p1554_p2 = scmp.lt.s32.totalorder %s1548_s12, %s1548_s12 }
   0x5   :  { %p1555_p3 = por %p1554_p2, %p1553_p1 }
   0x7   :  { %p1556_p4 = pnand %p1555_p3, %p1549_p0 }
   0x9   :  { %1559 = shalt.err (!%p1556_p4)  }
   0xa   :  { %s1670_s13 = smov [#allocation5]  }
   0xb   :  { %18 = dma.vmem_to_smem %s16_s11, 16, %s1670_s13, [#allocation4] }
   0xc   :  { %1660 = dma.done.wait [#allocation4], 16 }
   0xd   :  { %1661 = vsyncadd [#allocation4], 4294967280 }
   0xe   :  { %20 = sfence }
   0xf   :  { %21 = vsyncpa [#allocation7], 0 }
  0x10   :  { %22 = vsyncpa [#allocation10], 0 }
  0x11   :  { %23 = vsyncpa [#allocation13], 0 }
  0x12   :  { %24 = vsyncpa [#allocation8], 0  ;;  %s1671_s14 = smov [#allocation9]   ;;  %s1672_s0 = smov [#allocation6]  }
  0x13   :  { %s42_s15 = sshll.u32 %s1671_s14, 4  ;;  %s30_s16 = sshll.u32 %s1672_s0, 4  ;;  %s43_s15 = int_to_ptr.vmem [resolvable:$true] %s42_s15  ;;  %s31_s16 = int_to_ptr.vmem [resolvable:$true] %s30_s16 }
  0x14   :  { %s1568_s17 = scalar_lea.vmem %s43_s15, 2048  ;;  %p1573_p6 = scmp.lt.s32.totalorder %s43_s15, %s43_s15 }
  0x15   :  { %p1569_p5 = scmp.ne.s32.totalorder %s43_s15, %s1568_s17  ;;  %p1574_p7 = scmp.lt.s32.totalorder %s1568_s17, %s1568_s17 }
  0x17   :  { %p1575_p8 = por %p1574_p7, %p1573_p6 }
  0x19   :  { %p1576_p9 = pnand %p1575_p8, %p1569_p5 }
  0x1b   :  { %1579 = shalt.err (!%p1576_p9)
}
  0x1c   :  { %s1673_s18 = smov 128   ;;  %s1674_s19 = smov 8  }
  0x1d   :  { %48 = dma.hbm_to_vmem [thread:$0]  %s2096_s2, 2048, %s43_s15, [#allocation10], %s1673_s18, %s1673_s18, %s1674_s19  }
  0x1e   :  { %s1588_s22 = scalar_lea.vmem %s31_s16, 1024  ;;  %p1593_p11 = scmp.lt.s32.totalorder %s31_s16, %s31_s16 }
  0x1f   :  { %p1589_p10 = scmp.ne.s32.totalorder %s31_s16, %s1588_s22  ;;  %p1594_p12 = scmp.lt.s32.totalorder %s1588_s22, %s1588_s22 }
  0x21   :  { %p1595_p13 = por %p1594_p12, %p1593_p11 }
  0x23   :  { %p1596_p0 = pnand %p1595_p13, %p1589_p10 }
  0x25   :  { %1599 = shalt.err (!%p1596_p0)
}
  0x26   :  { %36 = dma.hbm_to_vmem [thread:$0]  %s2095_s1, 1024, %s31_s16, [#allocation7], %s1673_s18, %s1673_s18, %s1674_s19  }
  0x27   :  { %s1675_s25 = smov [#allocation11]   ;;  %s1676_s27 = smov [#allocation12]  }
  0x28   :  { %s54_s26 = sshll.u32 %s1675_s25, 4  ;;  %s66_s28 = sshll.u32 %s1676_s27, 4  ;;  %s55_s26 = int_to_ptr.vmem [resolvable:$true] %s54_s26  ;;  %s67_s28 = int_to_ptr.vmem [resolvable:$true] %s66_s28 }
  0x29   :  { %s1608_s2 = scalar_lea.vmem %s55_s26, 2048  ;;  %p1613_p2 = scmp.lt.s32.totalorder %s55_s26, %s55_s26 }
  0x2a   :  { %p1609_p1 = scmp.ne.s32.totalorder %s55_s26, %s1608_s2  ;;  %p1614_p3 = scmp.lt.s32.totalorder %s1608_s2, %s1608_s2 }
  0x2c   :  { %p1615_p4 = por %p1614_p3, %p1613_p2 }
  0x2e   :  { %p1616_p5 = pnand %p1615_p4, %p1609_p1 }
  0x30   :  { %1619 = shalt.err (!%p1616_p5)
}
  0x31   :  { %60 = dma.hbm_to_vmem [thread:$0]  %s2097_s3, 2048, %s55_s26, [#allocation10], %s1673_s18, %s1673_s18, %s1674_s19  }
  0x32   :  { %s1628_s1 = scalar_lea.vmem %s67_s28, 2048  ;;  %p1633_p7 = scmp.lt.s32.totalorder %s67_s28, %s67_s28 }
  0x33   :  { %p1629_p6 = scmp.ne.s32.totalorder %s67_s28, %s1628_s1  ;;  %p1634_p8 = scmp.lt.s32.totalorder %s1628_s1, %s1628_s1 }
  0x35   :  { %p1635_p9 = por %p1634_p8, %p1633_p7 }
  0x37   :  { %p1636_p10 = pnand %p1635_p9, %p1629_p6 }
  0x39   :  { %1639 = shalt.err (!%p1636_p10)
}
  0x3a   :  { %72 = dma.hbm_to_vmem [thread:$0]  %s2098_s4, 2048, %s67_s28, [#allocation13], %s1673_s18, %s1673_s18, %s1674_s19  }
  0x3b   :  { %1662 = dma.done.wait [#allocation7], 1024  }
  0x3c   :  { %1663 = vsyncadd [#allocation7], 4294966272 }
  0x3d   :  { %1664 = dma.done.wait [#allocation10], 4096  }
  0x3e   :  { %1665 = vsyncadd [#allocation10], 4294963200 }
  0x3f   :  { %1666 = dma.done.wait [#allocation13], 2048  }
  0x40   :  { %1667 = vsyncadd [#allocation13], 4294965248  ;;  %v1677_v0 = vmov 0.0   ;;  %vm1678_vm0 = vmmov 0   ;;  %v114_v1 = vld [vmem:[#allocation11 + $0x78] sm:$0xff]  ;;  %v113_v2 = vld [vmem:[#allocation11 + $0x70] sm:$0xff] }
  0x41   :  { %1207 = vmatprep.subr.mxu1 %v1677_v0  ;;  %1239 = vmatprep.mubr.msk.f32.mxu1 %vm1678_vm0, %v1677_v0  ;;  %v112_v3 = vld [vmem:[#allocation11 + $0x68] sm:$0xff]  ;;  %v111_v4 = vld [vmem:[#allocation11 + $0x60] sm:$0xff]  ;;  %v1760_v5 = vld [vmem:[#allocation9 + $0x78] sm:$0xff]  ;;  %s978_s14 = sld [smem:[#allocation5 + $0x1]]  ;;  %s1679_s30 = smov [#allocation14]  }
  0x42   :  { %1163 = vmatprep.subr.mxu0 %v114_v1  ;;  %v1762_v6 = vld [vmem:[#allocation9 + $0x70] sm:$0xff]  ;;  %1208 = vmatpush3.msra.mxu1 %v1760_v5  ;;  %v110_v7 = vld [vmem:[#allocation11 + $0x58] sm:$0xff]  ;;  %v1766_v8 = vld [vmem:[#allocation9 + $0x68] sm:$0xff]  ;;  %s979_s0 = sld [smem:[#allocation5 + $0x2]]  ;;  %s954_s1 = sshll.u32 %s1679_s30, 4  ;;  %s955_s1 = int_to_ptr.vmem [resolvable:$true] %s954_s1 }
  0x43   :  { %1164 = vmatpush3.msra.mxu0 %v114_v1  ;;  %1209 = vmatprep.subr.mxu1 %v1677_v0  ;;  %v109_v9 = vld [vmem:[#allocation11 + $0x50] sm:$0xff]  ;;  %v1770_v10 = vld [vmem:[#allocation9 + $0x60] sm:$0xff]  ;;  %v108_v11 = vld [vmem:[#allocation11 + $0x48] sm:$0xff]  ;;  %s980_s17 = sld [smem:[#allocation5 + $0x3]]  ;;  %s1640_s10 = scalar_lea.vmem %s955_s1, 128 }
  0x44   :  { %1165 = vmatprep.subr.mxu0 %v113_v2  ;;  %1210 = vmatpush3.msra.mxu1 %v1762_v6  ;;  %v91_v12 = vld [vmem:[#allocation6] sm:$0xff]  ;;  %v1775_v13 = vld [vmem:[#allocation9 + $0x58] sm:$0xff]  ;;  %v1778_v15 = vld [vmem:[#allocation9 + $0x50] sm:$0xff]  ;;  %s981_s19 = sld [smem:[#allocation5 + $0x4]]  ;;  %p1641_p11 = scmp.ne.s32.totalorder %s955_s1, %s1640_s10 }
  0x45   :  { %1166 = vmatpush3.msra.mxu0 %v113_v2  ;;  %1211 = vmatprep.subr.mxu1 %v1677_v0  ;;  %v107_v14 = vld [vmem:[#allocation11 + $0x40] sm:$0xff]  ;;  %v106_v16 = vld [vmem:[#allocation11 + $0x38] sm:$0xff]  ;;  %v1782_v17 = vld [vmem:[#allocation9 + $0x48] sm:$0xff]  ;;  %s982_s21 = sld [smem:[#allocation5 + $0x5]]  ;;  %p1645_p12 = scmp.lt.s32.totalorder %s955_s1, %s955_s1 }
  0x46   :  { %1167 = vmatprep.subr.mxu0 %v112_v3  ;;  %1212 = vmatpush3.msra.mxu1 %v1766_v8  ;;  %v105_v18 = vld [vmem:[#allocation11 + $0x30] sm:$0xff]  ;;  %v1786_v19 = vld [vmem:[#allocation9 + $0x40] sm:$0xff]  ;;  %v104_v20 = vld [vmem:[#allocation11 + $0x28] sm:$0xff]  ;;  %s983_s23 = sld [smem:[#allocation5 + $0x6]]  ;;  %p1646_p13 = scmp.lt.s32.totalorder %s1640_s10, %s1640_s10 }
  0x47   :  { %1168 = vmatpush3.msra.mxu0 %v112_v3  ;;  %1213 = vmatprep.subr.mxu1 %v1677_v0  ;;  %v1790_v21 = vld [vmem:[#allocation9 + $0x38] sm:$0xff]  ;;  %v103_v22 = vld [vmem:[#allocation11 + $0x20] sm:$0xff]  ;;  %v1794_v23 = vld [vmem:[#allocation9 + $0x30] sm:$0xff]  ;;  %s328_s15 = scalar_lea.vmem [#allocation2], %s978_s14  ;;  %s984_s25 = sld [smem:[#allocation5 + $0x7]] }
  0x48   :  { %1169 = vmatprep.subr.mxu0 %v111_v4  ;;  %1214 = vmatpush3.msra.mxu1 %v1770_v10  ;;  %v102_v24 = vld [vmem:[#allocation11 + $0x18] sm:$0xff]  ;;  %v1798_v25 = vld [vmem:[#allocation9 + $0x28] sm:$0xff]  ;;  %v101_v26 = vld [vmem:[#allocation11 + $0x10] sm:$0xff]  ;;  %s403_s16 = scalar_lea.vmem [#allocation2], %s979_s0  ;;  %p1647_p0 = por %p1646_p13, %p1645_p12 }
  0x49   :  { %1170 = vmatpush3.msra.mxu0 %v111_v4  ;;  %1215 = vmatprep.subr.mxu1 %v1677_v0  ;;  %v1802_v27 = vld [vmem:[#allocation9 + $0x20] sm:$0xff]  ;;  %v100_v28 = vld [vmem:[#allocation11 + $0x8] sm:$0xff]  ;;  %v1806_v29 = vld [vmem:[#allocation9 + $0x18] sm:$0xff]  ;;  %s478_s18 = scalar_lea.vmem [#allocation2], %s980_s17 }
  0x4a   :  { %1171 = vmatprep.subr.mxu0 %v110_v7  ;;  %1195 = vmatprep.mubr.f32.mxu0 %v91_v12  ;;  %v99_v30 = vld [vmem:[#allocation11] sm:$0xff]  ;;  %v1810_v31 = vld [vmem:[#allocation9 + $0x10] sm:$0xff]  ;;  %v92_v32 = vld [vmem:[#allocation6 + $0x8] sm:$0xff]  ;;  %s553_s20 = scalar_lea.vmem [#allocation2], %s981_s19  ;;  %p1648_p1 = pnand %p1647_p0, %p1641_p11 }
  0x4b   :  { %1172 = vmatpush3.msra.mxu0 %v110_v7  ;;  %1216 = vmatpush3.msra.mxu1 %v1775_v13  ;;  %v93_v33 = vld [vmem:[#allocation6 + $0x10] sm:$0xff]  ;;  %v1814_v34 = vld [vmem:[#allocation9 + $0x8] sm:$0xff]  ;;  %v1818_v35 = vld [vmem:[#allocation9] sm:$0xff]  ;;  %s628_s22 = scalar_lea.vmem [#allocation2], %s982_s21 }
  0x4c   :  { %1173 = vmatprep.subr.mxu0 %v109_v9  ;;  %1217 = vmatprep.subr.mxu1 %v1677_v0  ;;  %v94_v36 = vld [vmem:[#allocation6 + $0x18] sm:$0xff]  ;;  %v95_v38 = vld [vmem:[#allocation6 + $0x20] sm:$0xff]  ;;  %v96_v39 = vld [vmem:[#allocation6 + $0x28] sm:$0xff]  ;;  %s703_s24 = scalar_lea.vmem [#allocation2], %s983_s23 }
  0x4d   :  { %1174 = vmatpush3.msra.mxu0 %v109_v9  ;;  %1218 = vmatpush3.msra.mxu1 %v1778_v15  ;;  %v251_v37 = vld [vmem:[%s2101_s7] sm:$0x1]  ;;  %v97_v40 = vld [vmem:[#allocation6 + $0x30] sm:$0xff]  ;;  %s778_s26 = scalar_lea.vmem [#allocation2], %s984_s25 }
  0x4e   :  { %1175 = vmatprep.subr.mxu0 %v108_v11  ;;  %1219 = vmatprep.subr.mxu1 %v1677_v0  ;;  %v98_v41 = vld [vmem:[#allocation6 + $0x38] sm:$0xff] }
  0x4f   :  { %1176 = vmatpush3.msra.mxu0 %v108_v11  ;;  %1220 = vmatpush3.msra.mxu1 %v1782_v17  ;;  %v977_v42 = vld [vmem:[%s2099_s5] ss:$0 sm:$0xff]  ;;  %s252_s5 = sld [smem:[#allocation5]] }
  0x50   :  { %1177 = vmatprep.subr.mxu0 %v107_v14  ;;  %1221 = vmatprep.subr.mxu1 %v1677_v0 }
  0x51   :  { %1178 = vmatpush3.msra.mxu0 %v107_v14  ;;  %1222 = vmatpush3.msra.mxu1 %v1786_v19 }
  0x52   :  { %1179 = vmatprep.subr.mxu0 %v106_v16  ;;  %1223 = vmatprep.subr.mxu1 %v1677_v0 }
  0x53   :  { %1180 = vmatpush3.msra.mxu0 %v106_v16  ;;  %1224 = vmatpush3.msra.mxu1 %v1790_v21 }
  0x54   :  { %1181 = vmatprep.subr.mxu0 %v105_v18  ;;  %1225 = vmatprep.subr.mxu1 %v1677_v0 }
  0x55   :  { %1182 = vmatpush3.msra.mxu0 %v105_v18  ;;  %1226 = vmatpush3.msra.mxu1 %v1794_v23  ;;  %s253_s13 = scalar_lea.vmem [#allocation2], %s252_s5 }
  0x56   :  { %1183 = vmatprep.subr.mxu0 %v104_v20  ;;  %1227 = vmatprep.subr.mxu1 %v1677_v0 }
  0x57   :  { %1184 = vmatpush3.msra.mxu0 %v104_v20  ;;  %1228 = vmatpush3.msra.mxu1 %v1798_v25 }
  0x58   :  { %1185 = vmatprep.subr.mxu0 %v103_v22  ;;  %1229 = vmatprep.subr.mxu1 %v1677_v0 }
  0x59   :  { %1186 = vmatpush3.msra.mxu0 %v103_v22  ;;  %1230 = vmatpush3.msra.mxu1 %v1802_v27 }
  0x5a   :  { %1187 = vmatprep.subr.mxu0 %v102_v24  ;;  %1231 = vmatprep.subr.mxu1 %v1677_v0 }
  0x5b   :  { %1188 = vmatpush3.msra.mxu0 %v102_v24  ;;  %1232 = vmatpush3.msra.mxu1 %v1806_v29 }
  0x5c   :  { %1189 = vmatprep.subr.mxu0 %v101_v26  ;;  %1233 = vmatprep.subr.mxu1 %v1677_v0 }
  0x5d   :  { %1190 = vmatpush3.msra.mxu0 %v101_v26  ;;  %1234 = vmatpush3.msra.mxu1 %v1810_v31 }
  0x5e   :  { %1191 = vmatprep.subr.mxu0 %v100_v28  ;;  %1235 = vmatprep.subr.mxu1 %v1677_v0 }
  0x5f   :  { %1192 = vmatpush3.msra.mxu0 %v100_v28  ;;  %1236 = vmatpush3.msra.mxu1 %v1814_v34 }
  0x60   :  { %1193 = vmatprep.subr.mxu0 %v99_v30  ;;  %1237 = vmatprep.subr.mxu1 %v1677_v0 }
  0x61   :  { %1194 = vmatpush3.msra.mxu0 %v99_v30  ;;  %1238 = vmatpush3.msra.mxu1 %v1818_v35 }
  0x62   :  { %1196 = vmatmul.mubr.f32.vlgmr.msra.gmra.mxu0 %v92_v32  ;;  %1242 = vmatprep.subr.mxu0 %v1677_v0 }
  0x63   :  { %1198 = vmatprep.mubr.f32.mxu0 %v93_v33  ;;  %1243 = vmatpush3.msra.mxu0 %v1760_v5 }
  0x64   :  { %1240 = vmatmul.mubr.f32.vlgmr.msra.gmra.mxu1 %v251_v37  ;;  %1244 = vmatprep.subr.mxu0 %v1677_v0  ;;  %v863_v37 = vld [vmem:[#allocation12 + $0x48] sm:$0xff] }
  0x65   :  { %1245 = vmatpush3.msra.mxu0 %v1762_v6  ;;  %1277 = vmatprep.subr.mxu1 %v1677_v0 }
  0x66   :  { %1199 = vmatmul.mubr.f32.gmra.mxu0 %v94_v36  ;;  %1246 = vmatprep.subr.mxu0 %v1677_v0 }
  0x67   :  { %1201 = vmatprep.mubr.f32.mxu0 %v95_v38  ;;  %1278 = vmatpush3.msra.mxu1 %v1760_v5  ;;  %v862_v38 = vld [vmem:[#allocation12 + $0x40] sm:$0xff] }
  0x68   :  { %1279 = vmatprep.subr.mxu1 %v1677_v0  ;;  %1247 = vmatpush3.msra.mxu0 %v1766_v8 }
  0x69   :  { %1248 = vmatprep.subr.mxu0 %v1677_v0  ;;  %1280 = vmatpush3.msra.mxu1 %v1762_v6 }
  0x6a   :  { %1202 = vmatmul.mubr.f32.gmra.mxu0 %v96_v39  ;;  %1281 = vmatprep.subr.mxu1 %v1677_v0  ;;  %v861_v39 = vld [vmem:[#allocation12 + $0x38] sm:$0xff] }
  0x6b   :  { %1204 = vmatprep.mubr.f32.mxu0 %v97_v40  ;;  %1249 = vmatpush3.msra.mxu0 %v1770_v10  ;;  %v860_v40 = vld [vmem:[#allocation12 + $0x30] sm:$0xff] }
  0x6c   :  { %1250 = vmatprep.subr.mxu0 %v1677_v0  ;;  %1282 = vmatpush3.msra.mxu1 %v1766_v8 }
  0x6d   :  { %1251 = vmatpush3.msra.mxu0 %v1775_v13  ;;  %1283 = vmatprep.subr.mxu1 %v1677_v0 }
  0x6e   :  { %1205 = vmatmul.mubr.f32.gmra.mxu0 %v98_v41  ;;  %1252 = vmatprep.subr.mxu0 %v1677_v0  ;;  %v859_v41 = vld [vmem:[#allocation12 + $0x28] sm:$0xff] }
  0x6f   :  { %1274 = vmatprep.mubr.msk.f32.mxu0 %vm1678_vm0, %v1677_v0  ;;  %1253 = vmatpush3.msra.mxu0 %v1778_v15 }
  0x70   :  { %1254 = vmatprep.subr.mxu0 %v1677_v0  ;;  %1284 = vmatpush3.msra.mxu1 %v1770_v10 }
  0x71   :  { %1255 = vmatpush3.msra.mxu0 %v1782_v17  ;;  %1285 = vmatprep.subr.mxu1 %v1677_v0 }
  0x72   :  { %1256 = vmatprep.subr.mxu0 %v1677_v0  ;;  %1286 = vmatpush3.msra.mxu1 %v1775_v13 }
  0x73   :  { %1257 = vmatpush3.msra.mxu0 %v1786_v19  ;;  %1287 = vmatprep.subr.mxu1 %v1677_v0 }
  0x74   :  { %1258 = vmatprep.subr.mxu0 %v1677_v0  ;;  %1288 = vmatpush3.msra.mxu1 %v1778_v15 }
  0x75   :  { %1259 = vmatpush3.msra.mxu0 %v1790_v21  ;;  %1289 = vmatprep.subr.mxu1 %v1677_v0 }
  0x76   :  { %1260 = vmatprep.subr.mxu0 %v1677_v0  ;;  %1290 = vmatpush3.msra.mxu1 %v1782_v17 }
  0x77   :  { %1261 = vmatpush3.msra.mxu0 %v1794_v23  ;;  %1291 = vmatprep.subr.mxu1 %v1677_v0 }
  0x78   :  { %1262 = vmatprep.subr.mxu0 %v1677_v0  ;;  %1292 = vmatpush3.msra.mxu1 %v1786_v19 }
  0x79   :  { %1263 = vmatpush3.msra.mxu0 %v1798_v25  ;;  %1293 = vmatprep.subr.mxu1 %v1677_v0 }
  0x7a   :  { %1264 = vmatprep.subr.mxu0 %v1677_v0  ;;  %1294 = vmatpush3.msra.mxu1 %v1790_v21 }
  0x7b   :  { %1265 = vmatpush3.msra.mxu0 %v1802_v27  ;;  %1295 = vmatprep.subr.mxu1 %v1677_v0 }
  0x7c   :  { %1266 = vmatprep.subr.mxu0 %v1677_v0  ;;  %1296 = vmatpush3.msra.mxu1 %v1794_v23 }
  0x7d   :  { %1267 = vmatpush3.msra.mxu0 %v1806_v29  ;;  %1297 = vmatprep.subr.mxu1 %v1677_v0 }
  0x7e   :  { %1268 = vmatprep.subr.mxu0 %v1677_v0  ;;  %1298 = vmatpush3.msra.mxu1 %v1798_v25 }
  0x7f   :  { %1269 = vmatpush3.msra.mxu0 %v1810_v31  ;;  %1299 = vmatprep.subr.mxu1 %v1677_v0 }
  0x80   :  { %1270 = vmatprep.subr.mxu0 %v1677_v0  ;;  %1300 = vmatpush3.msra.mxu1 %v1802_v27 }
  0x81   :  { %1271 = vmatpush3.msra.mxu0 %v1814_v34  ;;  %1301 = vmatprep.subr.mxu1 %v1677_v0 }
  0x82   :  { %1272 = vmatprep.subr.mxu0 %v1677_v0  ;;  %1302 = vmatpush3.msra.mxu1 %v1806_v29 }
  0x83   :  { %1273 = vmatpush3.msra.mxu0 %v1818_v35  ;;  %1303 = vmatprep.subr.mxu1 %v1677_v0 }
  0x84   :  { %1304 = vmatpush3.msra.mxu1 %v1810_v31  ;;  %1309 = vmatprep.mubr.msk.f32.mxu1 %vm1678_vm0, %v1677_v0 }
  0x85   :  { %1305 = vmatprep.subr.mxu1 %v1677_v0  ;;  %1312 = vmatprep.subr.mxu0 %v1677_v0 }
  0x86   :  { %1306 = vmatpush3.msra.mxu1 %v1814_v34 }
  0x87   :  { %1307 = vmatprep.subr.mxu1 %v1677_v0 }
  0x88   :  { %1308 = vmatpush3.msra.mxu1 %v1818_v35 }
  0x89   :  { %1347 = vmatprep.subr.mxu1 %v1677_v0 }
 0x122   :  { %v1197_v43 = vpop.f32.mrf.mxu0 }
 0x123   :  { %v194_v44 = vadd.f32 %v1197_v43, %v977_v42  ;;  %v857_v43 = vld [vmem:[#allocation12 + $0x18] sm:$0xff] }
 0x124   :  { %v188_v45 = vpop.f32.mrf.mxu0  ;;  %v321_v48 = vpop.f32.mrf.mxu1 }
 0x125   :  { %228 = vst [vmem:[#allocation2 + $0x8] sm:$0xff] %v194_v44  ;;  %v189_v46 = vadd.f32 %v977_v42, %v188_v45  ;;  %v856_v44 = vld [vmem:[#allocation12 + $0x10] sm:$0xff]  ;;  %v855_v45 = vld [vmem:[#allocation12 + $0x8] sm:$0xff] }
 0x126   :  { %v1200_v47 = vpop.f32.mrf.mxu0  ;;  %v1241_v51 = vpop.f32.mrf.mxu1 }
 0x127   :  { %227 = vst [vmem:[#allocation2] sm:$0xff] %v189_v46  ;;  %v204_v49 = vadd.f32 %v1200_v47, %v977_v42  ;;  %v854_v46 = vld [vmem:[#allocation12] sm:$0xff] }
 0x128   :  { %v198_v50 = vpop.f32.mrf.mxu0 }
 0x129   :  { %230 = vst [vmem:[#allocation2 + $0x18] sm:$0xff] %v204_v49  ;;  %v199_v52 = vadd.f32 %v977_v42, %v198_v50 }
 0x12a   :  { %v1203_v53 = vpop.f32.mrf.mxu0 }
 0x12b   :  { %229 = vst [vmem:[#allocation2 + $0x10] sm:$0xff] %v199_v52  ;;  %v214_v54 = vadd.f32 %v1203_v53, %v977_v42 }
 0x12c   :  { %v208_v55 = vpop.f32.mrf.mxu0 }
 0x12d   :  { %232 = vst [vmem:[#allocation2 + $0x28] sm:$0xff] %v214_v54  ;;  %v209_v56 = vadd.f32 %v977_v42, %v208_v55 }
 0x12e   :  { %v1206_v57 = vpop.f32.mrf.mxu0 }
 0x12f   :  { %231 = vst [vmem:[#allocation2 + $0x20] sm:$0xff] %v209_v56  ;;  %v224_v58 = vadd.f32 %v1206_v57, %v977_v42 }
 0x130   :  { %v218_v59 = vpop.f32.mrf.mxu0 }
 0x131   :  { %234 = vst [vmem:[#allocation2 + $0x38] sm:$0xff] %v224_v58  ;;  %v219_v60 = vadd.f32 %v977_v42, %v218_v59  ;;  %v858_v42 = vld [vmem:[#allocation12 + $0x20] sm:$0xff] }
 0x133   :  { %233 = vst [vmem:[#allocation2 + $0x30] sm:$0xff] %v219_v60 }
 0x13a   :  { %v254_v61 = vld [vmem:[%s253_s13] sm:$0x1] }
 0x13b   :  { %v322_v62 = vadd.f32 %v321_v48, %v254_v61  ;;  %v329_v1 = vld [vmem:[%s328_s15] sm:$0x1] }
 0x13c   :  { %v404_v9 = vld [vmem:[%s403_s16] sm:$0x1] }
 0x13d   :  { %1532 = vtanh.f32 %v322_v62  ;;  %v479_v18 = vld [vmem:[%s478_s18] sm:$0x1] }
 0x13e   :  { %v554_v28 = vld [vmem:[%s553_s20] sm:$0x1] }
 0x13f   :  { %v779_v47 = vld [vmem:[%s778_s26] sm:$0x1] }
 0x14a   :  { %v1533_v63 = vpop.eup %1532 }
 0x14b   :  { %326 = vst [vmem:[#allocation3] sm:$0x1] %v1533_v63  ;;  %1275 = vmatmul.mubr.f32.vlgmr.msra.gmra.mxu0 %v1533_v63 }
 0x14c   :  { %1313 = vmatpush3.msra.mxu0 %v1760_v5  ;;  %1344 = vmatprep.mubr.msk.f32.mxu0 %vm1678_vm0, %v1677_v0 }
 0x14d   :  { %1314 = vmatprep.subr.mxu0 %v1677_v0 }
 0x14e   :  { %1315 = vmatpush3.msra.mxu0 %v1762_v6 }
 0x14f   :  { %1316 = vmatprep.subr.mxu0 %v1677_v0 }
 0x150   :  { %1317 = vmatpush3.msra.mxu0 %v1766_v8 }
 0x151   :  { %1318 = vmatprep.subr.mxu0 %v1677_v0 }
 0x152   :  { %1319 = vmatpush3.msra.mxu0 %v1770_v10 }
 0x153   :  { %1320 = vmatprep.subr.mxu0 %v1677_v0 }
 0x154   :  { %1321 = vmatpush3.msra.mxu0 %v1775_v13 }
 0x155   :  { %1322 = vmatprep.subr.mxu0 %v1677_v0 }
 0x156   :  { %1323 = vmatpush3.msra.mxu0 %v1778_v15 }
 0x157   :  { %1324 = vmatprep.subr.mxu0 %v1677_v0 }
 0x158   :  { %1325 = vmatpush3.msra.mxu0 %v1782_v17 }
 0x159   :  { %1326 = vmatprep.subr.mxu0 %v1677_v0 }
 0x15a   :  { %1327 = vmatpush3.msra.mxu0 %v1786_v19 }
 0x15b   :  { %1328 = vmatprep.subr.mxu0 %v1677_v0 }
 0x15c   :  { %1329 = vmatpush3.msra.mxu0 %v1790_v21 }
 0x15d   :  { %1330 = vmatprep.subr.mxu0 %v1677_v0 }
 0x15e   :  { %1331 = vmatpush3.msra.mxu0 %v1794_v23 }
 0x15f   :  { %1332 = vmatprep.subr.mxu0 %v1677_v0 }
 0x160   :  { %1333 = vmatpush3.msra.mxu0 %v1798_v25 }
 0x161   :  { %1334 = vmatprep.subr.mxu0 %v1677_v0 }
 0x162   :  { %1335 = vmatpush3.msra.mxu0 %v1802_v27 }
 0x163   :  { %1336 = vmatprep.subr.mxu0 %v1677_v0 }
 0x164   :  { %1337 = vmatpush3.msra.mxu0 %v1806_v29 }
 0x165   :  { %1338 = vmatprep.subr.mxu0 %v1677_v0 }
 0x166   :  { %1339 = vmatpush3.msra.mxu0 %v1810_v31 }
 0x167   :  { %1340 = vmatprep.subr.mxu0 %v1677_v0 }
 0x168   :  { %1341 = vmatpush3.msra.mxu0 %v1814_v34 }
 0x169   :  { %1342 = vmatprep.subr.mxu0 %v1677_v0 }
 0x16a   :  { %1343 = vmatpush3.msra.mxu0 %v1818_v35 }
 0x16b   :  { %1382 = vmatprep.subr.mxu0 %v1677_v0 }
 0x20b   :  { %v396_v2 = vpop.f32.mrf.mxu0 }
 0x20c   :  { %v397_v3 = vadd.f32 %v396_v2, %v329_v1 }
 0x20d   :  { %v1276_v4 = vpop.f32.mrf.mxu0 }
 0x20e   :  { %1534 = vtanh.f32 %v397_v3 }
 0x21b   :  { %v1535_v7 = vpop.eup %1534 }
 0x21c   :  { %401 = vst [vmem:[#allocation3 + $0x1] sm:$0x1] %v1535_v7  ;;  %1310 = vmatmul.mubr.f32.vlgmr.msra.gmra.mxu1 %v1535_v7 }
 0x21d   :  { %1348 = vmatpush3.msra.mxu1 %v1760_v5  ;;  %1379 = vmatprep.mubr.msk.f32.mxu1 %vm1678_vm0, %v1677_v0 }
 0x21e   :  { %1349 = vmatprep.subr.mxu1 %v1677_v0 }
 0x21f   :  { %1350 = vmatpush3.msra.mxu1 %v1762_v6 }
 0x220   :  { %1351 = vmatprep.subr.mxu1 %v1677_v0 }
 0x221   :  { %1352 = vmatpush3.msra.mxu1 %v1766_v8 }
 0x222   :  { %1353 = vmatprep.subr.mxu1 %v1677_v0 }
 0x223   :  { %1354 = vmatpush3.msra.mxu1 %v1770_v10 }
 0x224   :  { %1355 = vmatprep.subr.mxu1 %v1677_v0 }
 0x225   :  { %1356 = vmatpush3.msra.mxu1 %v1775_v13 }
 0x226   :  { %1357 = vmatprep.subr.mxu1 %v1677_v0 }
 0x227   :  { %1358 = vmatpush3.msra.mxu1 %v1778_v15 }
 0x228   :  { %1359 = vmatprep.subr.mxu1 %v1677_v0 }
 0x229   :  { %1360 = vmatpush3.msra.mxu1 %v1782_v17 }
 0x22a   :  { %1361 = vmatprep.subr.mxu1 %v1677_v0 }
 0x22b   :  { %1362 = vmatpush3.msra.mxu1 %v1786_v19 }
 0x22c   :  { %1363 = vmatprep.subr.mxu1 %v1677_v0 }
 0x22d   :  { %1364 = vmatpush3.msra.mxu1 %v1790_v21 }
 0x22e   :  { %1365 = vmatprep.subr.mxu1 %v1677_v0 }
 0x22f   :  { %1366 = vmatpush3.msra.mxu1 %v1794_v23 }
 0x230   :  { %1367 = vmatprep.subr.mxu1 %v1677_v0 }
 0x231   :  { %1368 = vmatpush3.msra.mxu1 %v1798_v25 }
 0x232   :  { %1369 = vmatprep.subr.mxu1 %v1677_v0 }
 0x233   :  { %1370 = vmatpush3.msra.mxu1 %v1802_v27 }
 0x234   :  { %1371 = vmatprep.subr.mxu1 %v1677_v0 }
 0x235   :  { %1372 = vmatpush3.msra.mxu1 %v1806_v29 }
 0x236   :  { %1373 = vmatprep.subr.mxu1 %v1677_v0 }
 0x237   :  { %1374 = vmatpush3.msra.mxu1 %v1810_v31 }
 0x238   :  { %1375 = vmatprep.subr.mxu1 %v1677_v0 }
 0x239   :  { %1376 = vmatpush3.msra.mxu1 %v1814_v34 }
 0x23a   :  { %1377 = vmatprep.subr.mxu1 %v1677_v0 }
 0x23b   :  { %1378 = vmatpush3.msra.mxu1 %v1818_v35 }
 0x23c   :  { %1417 = vmatprep.subr.mxu1 %v1677_v0 }
 0x2dc   :  { %v471_v11 = vpop.f32.mrf.mxu1 }
 0x2dd   :  { %v472_v12 = vadd.f32 %v471_v11, %v404_v9 }
 0x2de   :  { %v1311_v14 = vpop.f32.mrf.mxu1 }
 0x2df   :  { %1536 = vtanh.f32 %v472_v12 }
 0x2ec   :  { %v1537_v16 = vpop.eup %1536 }
 0x2ed   :  { %476 = vst [vmem:[#allocation3 + $0x2] sm:$0x1] %v1537_v16  ;;  %1345 = vmatmul.mubr.f32.vlgmr.msra.gmra.mxu0 %v1537_v16 }
 0x2ee   :  { %1383 = vmatpush3.msra.mxu0 %v1760_v5  ;;  %1414 = vmatprep.mubr.msk.f32.mxu0 %vm1678_vm0, %v1677_v0 }
 0x2ef   :  { %1384 = vmatprep.subr.mxu0 %v1677_v0 }
 0x2f0   :  { %1385 = vmatpush3.msra.mxu0 %v1762_v6 }
 0x2f1   :  { %1386 = vmatprep.subr.mxu0 %v1677_v0 }
 0x2f2   :  { %1387 = vmatpush3.msra.mxu0 %v1766_v8 }
 0x2f3   :  { %1388 = vmatprep.subr.mxu0 %v1677_v0 }
 0x2f4   :  { %1389 = vmatpush3.msra.mxu0 %v1770_v10 }
 0x2f5   :  { %1390 = vmatprep.subr.mxu0 %v1677_v0 }
 0x2f6   :  { %1391 = vmatpush3.msra.mxu0 %v1775_v13 }
 0x2f7   :  { %1392 = vmatprep.subr.mxu0 %v1677_v0 }
 0x2f8   :  { %1393 = vmatpush3.msra.mxu0 %v1778_v15 }
 0x2f9   :  { %1394 = vmatprep.subr.mxu0 %v1677_v0 }
 0x2fa   :  { %1395 = vmatpush3.msra.mxu0 %v1782_v17 }
 0x2fb   :  { %1396 = vmatprep.subr.mxu0 %v1677_v0 }
 0x2fc   :  { %1397 = vmatpush3.msra.mxu0 %v1786_v19 }
 0x2fd   :  { %1398 = vmatprep.subr.mxu0 %v1677_v0 }
 0x2fe   :  { %1399 = vmatpush3.msra.mxu0 %v1790_v21 }
 0x2ff   :  { %1400 = vmatprep.subr.mxu0 %v1677_v0 }
 0x300   :  { %1401 = vmatpush3.msra.mxu0 %v1794_v23 }
 0x301   :  { %1402 = vmatprep.subr.mxu0 %v1677_v0 }
 0x302   :  { %1403 = vmatpush3.msra.mxu0 %v1798_v25 }
 0x303   :  { %1404 = vmatprep.subr.mxu0 %v1677_v0 }
 0x304   :  { %1405 = vmatpush3.msra.mxu0 %v1802_v27 }
 0x305   :  { %1406 = vmatprep.subr.mxu0 %v1677_v0 }
 0x306   :  { %1407 = vmatpush3.msra.mxu0 %v1806_v29 }
 0x307   :  { %1408 = vmatprep.subr.mxu0 %v1677_v0 }
 0x308   :  { %1409 = vmatpush3.msra.mxu0 %v1810_v31 }
 0x309   :  { %1410 = vmatprep.subr.mxu0 %v1677_v0 }
 0x30a   :  { %1411 = vmatpush3.msra.mxu0 %v1814_v34 }
 0x30b   :  { %1412 = vmatprep.subr.mxu0 %v1677_v0 }
 0x30c   :  { %1413 = vmatpush3.msra.mxu0 %v1818_v35 }
 0x30d   :  { %1452 = vmatprep.subr.mxu0 %v1677_v0 }
 0x3ad   :  { %v546_v20 = vpop.f32.mrf.mxu0 }
 0x3ae   :  { %v547_v22 = vadd.f32 %v546_v20, %v479_v18 }
 0x3af   :  { %v1346_v24 = vpop.f32.mrf.mxu0 }
 0x3b0   :  { %1538 = vtanh.f32 %v547_v22 }
 0x3bd   :  { %v1539_v26 = vpop.eup %1538 }
 0x3be   :  { %551 = vst [vmem:[#allocation3 + $0x3] sm:$0x1] %v1539_v26  ;;  %1380 = vmatmul.mubr.f32.vlgmr.msra.gmra.mxu1 %v1539_v26 }
 0x3bf   :  { %1418 = vmatpush3.msra.mxu1 %v1760_v5  ;;  %1449 = vmatprep.mubr.msk.f32.mxu1 %vm1678_vm0, %v1677_v0 }
 0x3c0   :  { %1419 = vmatprep.subr.mxu1 %v1677_v0 }
 0x3c1   :  { %1420 = vmatpush3.msra.mxu1 %v1762_v6 }
 0x3c2   :  { %1421 = vmatprep.subr.mxu1 %v1677_v0 }
 0x3c3   :  { %1422 = vmatpush3.msra.mxu1 %v1766_v8 }
 0x3c4   :  { %1423 = vmatprep.subr.mxu1 %v1677_v0 }
 0x3c5   :  { %1424 = vmatpush3.msra.mxu1 %v1770_v10 }
 0x3c6   :  { %1425 = vmatprep.subr.mxu1 %v1677_v0 }
 0x3c7   :  { %1426 = vmatpush3.msra.mxu1 %v1775_v13 }
 0x3c8   :  { %1427 = vmatprep.subr.mxu1 %v1677_v0 }
 0x3c9   :  { %1428 = vmatpush3.msra.mxu1 %v1778_v15 }
 0x3ca   :  { %1429 = vmatprep.subr.mxu1 %v1677_v0 }
 0x3cb   :  { %1430 = vmatpush3.msra.mxu1 %v1782_v17 }
 0x3cc   :  { %1431 = vmatprep.subr.mxu1 %v1677_v0 }
 0x3cd   :  { %1432 = vmatpush3.msra.mxu1 %v1786_v19 }
 0x3ce   :  { %1433 = vmatprep.subr.mxu1 %v1677_v0 }
 0x3cf   :  { %1434 = vmatpush3.msra.mxu1 %v1790_v21 }
 0x3d0   :  { %1435 = vmatprep.subr.mxu1 %v1677_v0 }
 0x3d1   :  { %1436 = vmatpush3.msra.mxu1 %v1794_v23 }
 0x3d2   :  { %1437 = vmatprep.subr.mxu1 %v1677_v0 }
 0x3d3   :  { %1438 = vmatpush3.msra.mxu1 %v1798_v25 }
 0x3d4   :  { %1439 = vmatprep.subr.mxu1 %v1677_v0 }
 0x3d5   :  { %1440 = vmatpush3.msra.mxu1 %v1802_v27 }
 0x3d6   :  { %1441 = vmatprep.subr.mxu1 %v1677_v0 }
 0x3d7   :  { %1442 = vmatpush3.msra.mxu1 %v1806_v29 }
 0x3d8   :  { %1443 = vmatprep.subr.mxu1 %v1677_v0 }
 0x3d9   :  { %1444 = vmatpush3.msra.mxu1 %v1810_v31 }
 0x3da   :  { %1445 = vmatprep.subr.mxu1 %v1677_v0 }
 0x3db   :  { %1446 = vmatpush3.msra.mxu1 %v1814_v34 }
 0x3dc   :  { %1447 = vmatprep.subr.mxu1 %v1677_v0 }
 0x3dd   :  { %1448 = vmatpush3.msra.mxu1 %v1818_v35 }
 0x3de   :  { %1487 = vmatprep.subr.mxu1 %v1677_v0 }
 0x47e   :  { %v621_v30 = vpop.f32.mrf.mxu1 }
 0x47f   :  { %v622_v32 = vadd.f32 %v621_v30, %v554_v28 }
 0x480   :  { %v1381_v33 = vpop.f32.mrf.mxu1 }
 0x481   :  { %1540 = vtanh.f32 %v622_v32 }
 0x48e   :  { %v1541_v36 = vpop.eup %1540 }
 0x48f   :  { %626 = vst [vmem:[#allocation3 + $0x4] sm:$0x1] %v1541_v36  ;;  %1415 = vmatmul.mubr.f32.vlgmr.msra.gmra.mxu0 %v1541_v36 }
 0x490   :  { %1453 = vmatpush3.msra.mxu0 %v1760_v5  ;;  %1484 = vmatprep.mubr.msk.f32.mxu0 %vm1678_vm0, %v1677_v0  ;;  %v629_v5 = vld [vmem:[%s628_s22] sm:$0x1] }
 0x491   :  { %1454 = vmatprep.subr.mxu0 %v1677_v0 }
 0x492   :  { %1455 = vmatpush3.msra.mxu0 %v1762_v6 }
 0x493   :  { %1456 = vmatprep.subr.mxu0 %v1677_v0 }
 0x494   :  { %1457 = vmatpush3.msra.mxu0 %v1766_v8 }
 0x495   :  { %1458 = vmatprep.subr.mxu0 %v1677_v0 }
 0x496   :  { %1459 = vmatpush3.msra.mxu0 %v1770_v10 }
 0x497   :  { %1460 = vmatprep.subr.mxu0 %v1677_v0 }
 0x498   :  { %1461 = vmatpush3.msra.mxu0 %v1775_v13 }
 0x499   :  { %1462 = vmatprep.subr.mxu0 %v1677_v0 }
 0x49a   :  { %1463 = vmatpush3.msra.mxu0 %v1778_v15  ;;  %v869_v15 = vld [vmem:[#allocation12 + $0x78] sm:$0xff] }
 0x49b   :  { %1464 = vmatprep.subr.mxu0 %v1677_v0 }
 0x49c   :  { %1465 = vmatpush3.msra.mxu0 %v1782_v17  ;;  %v868_v17 = vld [vmem:[#allocation12 + $0x70] sm:$0xff] }
 0x49d   :  { %1466 = vmatprep.subr.mxu0 %v1677_v0 }
 0x49e   :  { %1467 = vmatpush3.msra.mxu0 %v1786_v19  ;;  %v867_v19 = vld [vmem:[#allocation12 + $0x68] sm:$0xff] }
 0x49f   :  { %1468 = vmatprep.subr.mxu0 %v1677_v0 }
 0x4a0   :  { %1469 = vmatpush3.msra.mxu0 %v1790_v21  ;;  %v704_v21 = vld [vmem:[%s703_s24] sm:$0x1] }
 0x4a1   :  { %1470 = vmatprep.subr.mxu0 %v1677_v0 }
 0x4a2   :  { %1471 = vmatpush3.msra.mxu0 %v1794_v23 }
 0x4a3   :  { %1472 = vmatprep.subr.mxu0 %v1677_v0 }
 0x4a4   :  { %1473 = vmatpush3.msra.mxu0 %v1798_v25 }
 0x4a5   :  { %1474 = vmatprep.subr.mxu0 %v1677_v0 }
 0x4a6   :  { %1475 = vmatpush3.msra.mxu0 %v1802_v27 }
 0x4a7   :  { %1476 = vmatprep.subr.mxu0 %v1677_v0 }
 0x4a8   :  { %1477 = vmatpush3.msra.mxu0 %v1806_v29 }
 0x4a9   :  { %1478 = vmatprep.subr.mxu0 %v1677_v0 }
 0x4aa   :  { %1479 = vmatpush3.msra.mxu0 %v1810_v31  ;;  %v866_v31 = vld [vmem:[#allocation12 + $0x60] sm:$0xff] }
 0x4ab   :  { %1480 = vmatprep.subr.mxu0 %v1677_v0 }
 0x4ac   :  { %1481 = vmatpush3.msra.mxu0 %v1814_v34  ;;  %v865_v34 = vld [vmem:[#allocation12 + $0x58] sm:$0xff] }
 0x4ad   :  { %1482 = vmatprep.subr.mxu0 %v1677_v0 }
 0x4ae   :  { %1483 = vmatpush3.msra.mxu0 %v1818_v35  ;;  %v864_v35 = vld [vmem:[#allocation12 + $0x50] sm:$0xff] }
 0x54f   :  { %v696_v6 = vpop.f32.mrf.mxu0 }
 0x550   :  { %v697_v8 = vadd.f32 %v696_v6, %v629_v5 }
 0x551   :  { %v1416_v10 = vpop.f32.mrf.mxu0 }
 0x552   :  { %1542 = vtanh.f32 %v697_v8 }
 0x55f   :  { %v1543_v13 = vpop.eup %1542 }
 0x560   :  { %701 = vst [vmem:[#allocation3 + $0x5] sm:$0x1] %v1543_v13  ;;  %1450 = vmatmul.mubr.f32.vlgmr.msra.gmra.mxu1 %v1543_v13 }
 0x561   :  { %1519 = vmatprep.mubr.msk.f32.mxu1 %vm1678_vm0, %v1677_v0  ;;  %1488 = vmatpush3.msra.mxu1 %v869_v15 }
 0x562   :  { %1489 = vmatprep.subr.mxu1 %v1677_v0 }
 0x563   :  { %1490 = vmatpush3.msra.mxu1 %v868_v17 }
 0x564   :  { %1491 = vmatprep.subr.mxu1 %v1677_v0 }
 0x565   :  { %1492 = vmatpush3.msra.mxu1 %v867_v19 }
 0x566   :  { %1493 = vmatprep.subr.mxu1 %v1677_v0 }
 0x567   :  { %1494 = vmatpush3.msra.mxu1 %v866_v31 }
 0x568   :  { %1495 = vmatprep.subr.mxu1 %v1677_v0 }
 0x569   :  { %1496 = vmatpush3.msra.mxu1 %v865_v34 }
 0x56a   :  { %1497 = vmatprep.subr.mxu1 %v1677_v0 }
 0x56b   :  { %1498 = vmatpush3.msra.mxu1 %v864_v35 }
 0x56c   :  { %1499 = vmatprep.subr.mxu1 %v1677_v0 }
 0x56d   :  { %1500 = vmatpush3.msra.mxu1 %v863_v37 }
 0x56e   :  { %1501 = vmatprep.subr.mxu1 %v1677_v0 }
 0x56f   :  { %1502 = vmatpush3.msra.mxu1 %v862_v38 }
 0x570   :  { %1503 = vmatprep.subr.mxu1 %v1677_v0 }
 0x571   :  { %1504 = vmatpush3.msra.mxu1 %v861_v39 }
 0x572   :  { %1505 = vmatprep.subr.mxu1 %v1677_v0 }
 0x573   :  { %1506 = vmatpush3.msra.mxu1 %v860_v40 }
 0x574   :  { %1507 = vmatprep.subr.mxu1 %v1677_v0 }
 0x575   :  { %1508 = vmatpush3.msra.mxu1 %v859_v41 }
 0x576   :  { %1509 = vmatprep.subr.mxu1 %v1677_v0 }
 0x577   :  { %1510 = vmatpush3.msra.mxu1 %v858_v42 }
 0x578   :  { %1511 = vmatprep.subr.mxu1 %v1677_v0 }
 0x579   :  { %1512 = vmatpush3.msra.mxu1 %v857_v43 }
 0x57a   :  { %1513 = vmatprep.subr.mxu1 %v1677_v0 }
 0x57b   :  { %1514 = vmatpush3.msra.mxu1 %v856_v44 }
 0x57c   :  { %1515 = vmatprep.subr.mxu1 %v1677_v0 }
 0x57d   :  { %1516 = vmatpush3.msra.mxu1 %v855_v45 }
 0x57e   :  { %1517 = vmatprep.subr.mxu1 %v1677_v0  ;;  %v985_v0 = vld [vmem:[%s2100_s6] ss:$0 sm:$0xff] }
 0x57f   :  { %1518 = vmatpush3.msra.mxu1 %v854_v46 }
 0x620   :  { %v771_v23 = vpop.f32.mrf.mxu1 }
 0x621   :  { %v772_v25 = vadd.f32 %v771_v23, %v704_v21 }
 0x622   :  { %v1451_v27 = vpop.f32.mrf.mxu1 }
 0x623   :  { %1544 = vtanh.f32 %v772_v25 }
 0x630   :  { %v1545_v29 = vpop.eup %1544 }
 0x631   :  { %776 = vst [vmem:[#allocation3 + $0x6] sm:$0x1] %v1545_v29  ;;  %1485 = vmatmul.mubr.f32.vlgmr.msra.gmra.mxu0 %v1545_v29 }
 0x6f1   :  { %v846_v48 = vpop.f32.mrf.mxu0 }
 0x6f2   :  { %v847_v49 = vadd.f32 %v846_v48, %v779_v47 }
 0x6f3   :  { %v1486_v50 = vpop.f32.mrf.mxu0 }
 0x6f4   :  { %1546 = vtanh.f32 %v847_v49 }
 0x701   :  { %v1547_v51 = vpop.eup %1546 }
 0x702   :  { %851 = vst [vmem:[#allocation3 + $0x7] sm:$0x1] %v1547_v51  ;;  %852 = vst [vmem:[%s2103_s9] sm:$0x1] %v1547_v51 }
 0x709   :  { %v853_v52 = vld [vmem:[#allocation3] sm:$0xff] }
 0x70a   :  { %1520 = vmatmul.mubr.f32.vlgmr.msra.gmra.mxu1 %v853_v52 }
 0x7ca   :  { %v943_v53 = vpop.f32.mrf.mxu1 }
 0x7cb   :  { %v944_v54 = vadd.f32 %v985_v0, %v943_v53 }
 0x7cc   :  { %v1521_v55 = vpop.f32.mrf.mxu1 }
 0x7cd   :  { %947 = vst [vmem:[#allocation14] sm:$0xff] %v944_v54 }
 0x7ce   :  { %1651 = shalt.err (!%p1648_p1)
}
 0x7cf   :  { %957 = dma.vmem_to_hbm [thread:$0]  %s955_s1, 128, %s2102_s8, [#allocation8]  }
 0x7d0   :  { %1668 = dma.done.wait [#allocation8], 128  }
 0x7d1   :  { %1669 = vsyncadd [#allocation8], 4294967168 }
 0x7d2   :  { %965 = vsyncpa [#allocation7], 1 }
 0x7d3   :  { %966 = vsyncpa [#allocation10], 1 }
 0x7d4   :  { %967 = vsyncpa [#allocation13], 1 }
 0x7d5   :  { %968 = vsyncpa [#allocation8], 1 }

</bundles_post_ra>
